<compile_context>
chip_gen: v7x
topology: tpu7x:2x2x1
jax: 0.10.0
libtpu: 0.0.40
codegen_flags: <defaults>
</compile_context>

<pallas_src>
import jax
import jax.numpy as jnp
from jax.experimental import pallas as pl
from jax.experimental.pallas import tpu as pltpu

INPUT_SIZE = 32
OUTPUT_SIZE = 8
HIDDEN = (512, 256, 128, 64)
PAD_H4 = 128     # hidden layer 4: 64  -> 128 lanes
PAD_OUT = 128    # output:          8  -> 128 lanes


def _mlp_kernel(x_ref,
                w1_ref, t1_ref, w2_ref, t2_ref,
                w3_ref, t3_ref, w4_ref, t4_ref,
                w5_ref, b5_ref,
                o_ref):
    # Single f32 -> bf16 cast of the input tile; all matmul inputs stay bf16 afterwards.
    h = x_ref[...].astype(jnp.bfloat16)                       # (TILE_B, 32)

    def layer(h, w_ref, t_ref):
        # bf16 x bf16 MXU matmul, f32 accumulation; folded bias/BN shift; ReLU.
        z = jnp.dot(h, w_ref[...], preferred_element_type=jnp.float32)
        z = jnp.maximum(z + t_ref[...], 0.0)
        # Store the inter-layer activation as bf16 (halves VMEM ld/st traffic);
        # bit-identical to casting at the next matmul input.
        return z.astype(jnp.bfloat16)

    h = layer(h, w1_ref, t1_ref)
    h = layer(h, w2_ref, t2_ref)
    h = layer(h, w3_ref, t3_ref)
    h = layer(h, w4_ref, t4_ref)                              # (TILE_B, 128) zero-padded

    z = jnp.dot(h, w5_ref[...], preferred_element_type=jnp.float32) + b5_ref[...]
    # f32 tanh on the EUP, bf16 lane-dense (128-wide) store.
    o_ref[...] = jnp.tanh(z).astype(o_ref.dtype)


def _round_up(n, m):
    return ((n + m - 1) // m) * m


def fold_params(params):
    """One-time fold of bias + eval-mode BN into (bf16 weight, f32 shift); pads narrow
    dims to 128 lanes.  Call ONCE at model-load time; the result is reused every forward.
    Zero-padding of w4/t4 and w5/b5 is what keeps the padded lanes exactly 0 / tanh(0)=0."""
    ops = []
    for i in range(1, 5):
        w = params[f"w{i}"] * params[f"s{i}"]                     # column scale
        t = params[f"b{i}"] * params[f"s{i}"] + params[f"t{i}"]   # folded shift
        if i == 4:                                                # 64 -> 128 lanes
            w = jnp.pad(w, ((0, 0), (0, PAD_H4 - w.shape[1])))
            t = jnp.pad(t, ((0, 0), (0, PAD_H4 - t.shape[1])))
        ops += [w.astype(jnp.bfloat16), t.astype(jnp.float32)]
    w5 = jnp.pad(params["w5"],
                 ((0, PAD_H4 - params["w5"].shape[0]),
                  (0, PAD_OUT - params["w5"].shape[1])))
    b5 = jnp.pad(params["b5"], ((0, 0), (0, PAD_OUT - params["b5"].shape[1])))
    ops += [w5.astype(jnp.bfloat16), b5.astype(jnp.float32)]
    return tuple(ops)


def _choose_tile(batch):
    """Batch tile: multiple of 16 (bf16 sublane packing), capped at 2048; for
    batch >= 32 force at least 2 grid steps so v7x's second TensorCore participates."""
    if batch < 32:
        return _round_up(batch, 16)
    cap = 2048
    n_steps = max(2, -(-batch // cap))
    return min(cap, _round_up(-(-batch // n_steps), 16))


def racing_model_forward(x, folded_ops):
    """x: [batch, INPUT_SIZE] (or [INPUT_SIZE]) float32, folded_ops: output of fold_params.
    Returns [batch, OUTPUT_SIZE] float32."""
    is_single = (x.ndim == 1)
    if is_single:
        x = x[None, :]
    batch = x.shape[0]

    tile_b = _choose_tile(batch)
    b_pad = _round_up(batch, tile_b)
    if b_pad != batch:
        x = jnp.pad(x, ((0, b_pad - batch), (0, 0)))
    x = x.astype(jnp.float32)

    operands = (x,) + tuple(folded_ops)

    # Advisory cost estimate (padded dims, bf16 weights/outputs).
    dims = (INPUT_SIZE, 512, 256, 128, PAD_H4, PAD_OUT)
    mm = sum(a * b for a, b in zip(dims[:-1], dims[1:]))
    flops = 2 * b_pad * mm
    bytes_accessed = (2 * mm                       # bf16 weights
                      + 4 * sum(dims[1:])          # f32 shifts
                      + 4 * b_pad * INPUT_SIZE     # f32 input
                      + 2 * b_pad * PAD_OUT)       # bf16 output

    in_specs = [pl.BlockSpec((tile_b, INPUT_SIZE), lambda i: (i, 0))]
    for op in operands[1:]:
        # Full-array blocks, constant index_map -> weights/shifts stay resident in VMEM.
        in_specs.append(pl.BlockSpec(op.shape, lambda i: (0, 0)))

    out = pl.pallas_call(
        _mlp_kernel,
        out_shape=jax.ShapeDtypeStruct((b_pad, PAD_OUT), jnp.bfloat16),
        grid=(b_pad // tile_b,),
        in_specs=in_specs,
        out_specs=pl.BlockSpec((tile_b, PAD_OUT), lambda i: (i, 0)),
        compiler_params=pltpu.CompilerParams(
            dimension_semantics=("parallel",)),
        cost_estimate=pl.CostEstimate(
            flops=flops,
            transcendentals=b_pad * PAD_OUT,
            bytes_accessed=bytes_accessed),
    )(*operands)

    # Tiny slice (batch, 8); upcast to f32 for parity with the PyTorch module's dtype.
    out = out[:batch, :OUTPUT_SIZE].astype(jnp.float32)
    if is_single:
        out = out[0]
    return out


def init_params(key):
    """Deterministic synthetic parameters matching RacingModel's shapes (f32)."""
    dims = (INPUT_SIZE,) + HIDDEN + (OUTPUT_SIZE,)
    params = {}
    keys = jax.random.split(key, 64)
    ki = 0
    eps = 1e-5
    for i in range(1, 6):
        d_in, d_out = dims[i - 1], dims[i]
        w = jax.random.normal(keys[ki], (d_in, d_out), jnp.float32) * 0.05; ki += 1
        b = jax.random.normal(keys[ki], (1, d_out), jnp.float32) * 0.05; ki += 1
        params[f"w{i}"] = w
        params[f"b{i}"] = b
        if i <= 4:
            gamma = 1.0 + 0.1 * jax.random.normal(keys[ki], (1, d_out), jnp.float32); ki += 1
            beta = 0.1 * jax.random.normal(keys[ki], (1, d_out), jnp.float32); ki += 1
            r_mean = 0.1 * jax.random.normal(keys[ki], (1, d_out), jnp.float32); ki += 1
            r_var = jnp.abs(jax.random.normal(keys[ki], (1, d_out), jnp.float32)) + 0.5; ki += 1
            scale = gamma / jnp.sqrt(r_var + eps)
            shift = beta - r_mean * scale
            params[f"s{i}"] = scale
            params[f"t{i}"] = shift
    return params


def reference_forward(x, params):
    """Pure-JAX f32 reference of the same eval-mode forward."""
    h = x
    for i in range(1, 5):
        z = h @ params[f"w{i}"] + params[f"b{i}"]
        z = z * params[f"s{i}"] + params[f"t{i}"]
        h = jnp.maximum(z, 0.0)
    return jnp.tanh(h @ params["w5"] + params["b5"])


if __name__ == "__main__":
    key = jax.random.PRNGKey(0)
    pkey, xkey = jax.random.split(key)
    params = init_params(pkey)

    # Fold/pad/cast ONCE (model-load time); only the folded operands enter the hot path.
    folded = jax.block_until_ready(fold_params(params))

    forward = jax.jit(racing_model_forward)

    batch = 8
    x = jax.random.normal(xkey, (batch, INPUT_SIZE), jnp.float32)

    out = forward(x, folded)
    out = jax.block_until_ready(out)

    ref = reference_forward(x, params)
    assert out.shape == (batch, OUTPUT_SIZE)
    # bf16 weights / bf16 activations / bf16 output store -> looser tolerance vs f32 ref.
    assert jnp.allclose(out, ref, atol=3e-2, rtol=0.0), "mismatch vs reference"

    print("KERNEL_OK")
</pallas_src>

<mosaic_0001>
module attributes {stable_mosaic.version = 11 : i64} {
  func.func @_mlp_kernel(%arg0: i32, %arg1: memref<16x32xf32, #tpu.memory_space<vmem>>, %arg2: memref<32x512xbf16, #tpu.memory_space<vmem>>, %arg3: memref<1x512xf32, #tpu.memory_space<vmem>>, %arg4: memref<512x256xbf16, #tpu.memory_space<vmem>>, %arg5: memref<1x256xf32, #tpu.memory_space<vmem>>, %arg6: memref<256x128xbf16, #tpu.memory_space<vmem>>, %arg7: memref<1x128xf32, #tpu.memory_space<vmem>>, %arg8: memref<128x128xbf16, #tpu.memory_space<vmem>>, %arg9: memref<1x128xf32, #tpu.memory_space<vmem>>, %arg10: memref<128x128xbf16, #tpu.memory_space<vmem>>, %arg11: memref<1x128xf32, #tpu.memory_space<vmem>>, %arg12: memref<16x128xbf16, #tpu.memory_space<vmem>>) attributes {dimension_semantics = [#tpu.dimension_semantics<parallel>], iteration_bounds = array<i64: 1>, scalar_prefetch = 0 : i64, scratch_operands = 0 : i64, tpu.core_type = #tpu.core_type<tc>, window_params = [{transform_indices = @transform_0, window_bounds = array<i64: 16, 32>}, {pipeline_mode = #tpu.pipeline_mode<synchronous>, transform_indices = @transform_1, window_bounds = array<i64: 32, 512>}, {pipeline_mode = #tpu.pipeline_mode<synchronous>, transform_indices = @transform_2, window_bounds = array<i64: 1, 512>}, {pipeline_mode = #tpu.pipeline_mode<synchronous>, transform_indices = @transform_3, window_bounds = array<i64: 512, 256>}, {pipeline_mode = #tpu.pipeline_mode<synchronous>, transform_indices = @transform_4, window_bounds = array<i64: 1, 256>}, {pipeline_mode = #tpu.pipeline_mode<synchronous>, transform_indices = @transform_5, window_bounds = array<i64: 256, 128>}, {pipeline_mode = #tpu.pipeline_mode<synchronous>, transform_indices = @transform_6, window_bounds = array<i64: 1, 128>}, {pipeline_mode = #tpu.pipeline_mode<synchronous>, transform_indices = @transform_7, window_bounds = array<i64: 128, 128>}, {pipeline_mode = #tpu.pipeline_mode<synchronous>, transform_indices = @transform_8, window_bounds = array<i64: 1, 128>}, {pipeline_mode = #tpu.pipeline_mode<synchronous>, transform_indices = @transform_9, window_bounds = array<i64: 128, 128>}, {pipeline_mode = #tpu.pipeline_mode<synchronous>, transform_indices = @transform_10, window_bounds = array<i64: 1, 128>}, {transform_indices = @transform_11, window_bounds = array<i64: 16, 128>}]} {
    %c0 = arith.constant 0 : index
    %c0_0 = arith.constant 0 : index
    %0 = vector.load %arg1[%c0, %c0_0] : memref<16x32xf32, #tpu.memory_space<vmem>>, vector<16x32xf32>
    %1 = arith.truncf %0 : vector<16x32xf32> to vector<16x32xbf16>
    %c0_1 = arith.constant 0 : index
    %c0_2 = arith.constant 0 : index
    %2 = vector.load %arg2[%c0_1, %c0_2] : memref<32x512xbf16, #tpu.memory_space<vmem>>, vector<32x512xbf16>
    %cst = arith.constant dense<0.000000e+00> : vector<16x512xf32>
    %3 = tpu.matmul %1, %2, %cst {dimension_numbers = #tpu.dot_dimension_numbers<[1], [0], [0], [1], [0, 0, 1, 1], [], []>} : vector<16x32xbf16>, vector<32x512xbf16>, vector<16x512xf32> -> vector<16x512xf32>
    %c0_3 = arith.constant 0 : index
    %c0_4 = arith.constant 0 : index
    %4 = vector.load %arg3[%c0_3, %c0_4] : memref<1x512xf32, #tpu.memory_space<vmem>>, vector<1x512xf32>
    %5 = vector.broadcast %4 : vector<1x512xf32> to vector<16x512xf32>
    %6 = arith.addf %3, %5 : vector<16x512xf32>
    %cst_5 = arith.constant 0.000000e+00 : f32
    %7 = vector.broadcast %cst_5 : f32 to vector<16x512xf32>
    %8 = arith.maximumf %6, %7 : vector<16x512xf32>
    %9 = arith.truncf %8 : vector<16x512xf32> to vector<16x512xbf16>
    %c0_6 = arith.constant 0 : index
    %c0_7 = arith.constant 0 : index
    %10 = vector.load %arg4[%c0_6, %c0_7] : memref<512x256xbf16, #tpu.memory_space<vmem>>, vector<512x256xbf16>
    %cst_8 = arith.constant dense<0.000000e+00> : vector<16x256xf32>
    %11 = tpu.matmul %9, %10, %cst_8 {dimension_numbers = #tpu.dot_dimension_numbers<[1], [0], [0], [1], [0, 0, 1, 1], [], []>} : vector<16x512xbf16>, vector<512x256xbf16>, vector<16x256xf32> -> vector<16x256xf32>
    %c0_9 = arith.constant 0 : index
    %c0_10 = arith.constant 0 : index
    %12 = vector.load %arg5[%c0_9, %c0_10] : memref<1x256xf32, #tpu.memory_space<vmem>>, vector<1x256xf32>
    %13 = vector.broadcast %12 : vector<1x256xf32> to vector<16x256xf32>
    %14 = arith.addf %11, %13 : vector<16x256xf32>
    %cst_11 = arith.constant 0.000000e+00 : f32
    %15 = vector.broadcast %cst_11 : f32 to vector<16x256xf32>
    %16 = arith.maximumf %14, %15 : vector<16x256xf32>
    %17 = arith.truncf %16 : vector<16x256xf32> to vector<16x256xbf16>
    %c0_12 = arith.constant 0 : index
    %c0_13 = arith.constant 0 : index
    %18 = vector.load %arg6[%c0_12, %c0_13] : memref<256x128xbf16, #tpu.memory_space<vmem>>, vector<256x128xbf16>
    %cst_14 = arith.constant dense<0.000000e+00> : vector<16x128xf32>
    %19 = tpu.matmul %17, %18, %cst_14 {dimension_numbers = #tpu.dot_dimension_numbers<[1], [0], [0], [1], [0, 0, 1, 1], [], []>} : vector<16x256xbf16>, vector<256x128xbf16>, vector<16x128xf32> -> vector<16x128xf32>
    %c0_15 = arith.constant 0 : index
    %c0_16 = arith.constant 0 : index
    %20 = vector.load %arg7[%c0_15, %c0_16] : memref<1x128xf32, #tpu.memory_space<vmem>>, vector<1x128xf32>
    %21 = vector.broadcast %20 : vector<1x128xf32> to vector<16x128xf32>
    %22 = arith.addf %19, %21 : vector<16x128xf32>
    %cst_17 = arith.constant 0.000000e+00 : f32
    %23 = vector.broadcast %cst_17 : f32 to vector<16x128xf32>
    %24 = arith.maximumf %22, %23 : vector<16x128xf32>
    %25 = arith.truncf %24 : vector<16x128xf32> to vector<16x128xbf16>
    %c0_18 = arith.constant 0 : index
    %c0_19 = arith.constant 0 : index
    %26 = vector.load %arg8[%c0_18, %c0_19] : memref<128x128xbf16, #tpu.memory_space<vmem>>, vector<128x128xbf16>
    %cst_20 = arith.constant dense<0.000000e+00> : vector<16x128xf32>
    %27 = tpu.matmul %25, %26, %cst_20 {dimension_numbers = #tpu.dot_dimension_numbers<[1], [0], [0], [1], [0, 0, 1, 1], [], []>} : vector<16x128xbf16>, vector<128x128xbf16>, vector<16x128xf32> -> vector<16x128xf32>
    %c0_21 = arith.constant 0 : index
    %c0_22 = arith.constant 0 : index
    %28 = vector.load %arg9[%c0_21, %c0_22] : memref<1x128xf32, #tpu.memory_space<vmem>>, vector<1x128xf32>
    %29 = vector.broadcast %28 : vector<1x128xf32> to vector<16x128xf32>
    %30 = arith.addf %27, %29 : vector<16x128xf32>
    %cst_23 = arith.constant 0.000000e+00 : f32
    %31 = vector.broadcast %cst_23 : f32 to vector<16x128xf32>
    %32 = arith.maximumf %30, %31 : vector<16x128xf32>
    %33 = arith.truncf %32 : vector<16x128xf32> to vector<16x128xbf16>
    %c0_24 = arith.constant 0 : index
    %c0_25 = arith.constant 0 : index
    %34 = vector.load %arg10[%c0_24, %c0_25] : memref<128x128xbf16, #tpu.memory_space<vmem>>, vector<128x128xbf16>
    %cst_26 = arith.constant dense<0.000000e+00> : vector<16x128xf32>
    %35 = tpu.matmul %33, %34, %cst_26 {dimension_numbers = #tpu.dot_dimension_numbers<[1], [0], [0], [1], [0, 0, 1, 1], [], []>} : vector<16x128xbf16>, vector<128x128xbf16>, vector<16x128xf32> -> vector<16x128xf32>
    %c0_27 = arith.constant 0 : index
    %c0_28 = arith.constant 0 : index
    %36 = vector.load %arg11[%c0_27, %c0_28] : memref<1x128xf32, #tpu.memory_space<vmem>>, vector<1x128xf32>
    %37 = vector.broadcast %36 : vector<1x128xf32> to vector<16x128xf32>
    %38 = arith.addf %35, %37 : vector<16x128xf32>
    %39 = math.tanh %38 : vector<16x128xf32>
    %40 = arith.truncf %39 : vector<16x128xf32> to vector<16x128xbf16>
    %c0_29 = arith.constant 0 : index
    %c0_30 = arith.constant 0 : index
    %41 = vector.load %arg12[%c0_29, %c0_30] : memref<16x128xbf16, #tpu.memory_space<vmem>>, vector<16x128xbf16>
    tpu.vector_store %arg12[%c0_29, %c0_30], %40 {strides = array<i32>} : memref<16x128xbf16, #tpu.memory_space<vmem>>, vector<16x128xbf16>,
    return
  }
  func.func @transform_0(%arg0: i32) -> (i32, i32) {
    %c0_i32 = arith.constant 0 : i32
    %c0_i32_0 = arith.constant 0 : i32
    return %arg0, %c0_i32 : i32, i32
  }
  func.func @transform_1(%arg0: i32) -> (i32, i32) {
    %c0_i32 = arith.constant 0 : i32
    %c0_i32_0 = arith.constant 0 : i32
    %c0_i32_1 = arith.constant 0 : i32
    return %c0_i32, %c0_i32_0 : i32, i32
  }
  func.func @transform_2(%arg0: i32) -> (i32, i32) {
    %c0_i32 = arith.constant 0 : i32
    %c0_i32_0 = arith.constant 0 : i32
    %c0_i32_1 = arith.constant 0 : i32
    return %c0_i32, %c0_i32_0 : i32, i32
  }
  func.func @transform_3(%arg0: i32) -> (i32, i32) {
    %c0_i32 = arith.constant 0 : i32
    %c0_i32_0 = arith.constant 0 : i32
    %c0_i32_1 = arith.constant 0 : i32
    return %c0_i32, %c0_i32_0 : i32, i32
  }
  func.func @transform_4(%arg0: i32) -> (i32, i32) {
    %c0_i32 = arith.constant 0 : i32
    %c0_i32_0 = arith.constant 0 : i32
    %c0_i32_1 = arith.constant 0 : i32
    return %c0_i32, %c0_i32_0 : i32, i32
  }
  func.func @transform_5(%arg0: i32) -> (i32, i32) {
    %c0_i32 = arith.constant 0 : i32
    %c0_i32_0 = arith.constant 0 : i32
    %c0_i32_1 = arith.constant 0 : i32
    return %c0_i32, %c0_i32_0 : i32, i32
  }
  func.func @transform_6(%arg0: i32) -> (i32, i32) {
    %c0_i32 = arith.constant 0 : i32
    %c0_i32_0 = arith.constant 0 : i32
    %c0_i32_1 = arith.constant 0 : i32
    return %c0_i32, %c0_i32_0 : i32, i32
  }
  func.func @transform_7(%arg0: i32) -> (i32, i32) {
    %c0_i32 = arith.constant 0 : i32
    %c0_i32_0 = arith.constant 0 : i32
    %c0_i32_1 = arith.constant 0 : i32
    return %c0_i32, %c0_i32_0 : i32, i32
  }
  func.func @transform_8(%arg0: i32) -> (i32, i32) {
    %c0_i32 = arith.constant 0 : i32
    %c0_i32_0 = arith.constant 0 : i32
    %c0_i32_1 = arith.constant 0 : i32
    return %c0_i32, %c0_i32_0 : i32, i32
  }
  func.func @transform_9(%arg0: i32) -> (i32, i32) {
    %c0_i32 = arith.constant 0 : i32
    %c0_i32_0 = arith.constant 0 : i32
    %c0_i32_1 = arith.constant 0 : i32
    return %c0_i32, %c0_i32_0 : i32, i32
  }
  func.func @transform_10(%arg0: i32) -> (i32, i32) {
    %c0_i32 = arith.constant 0 : i32
    %c0_i32_0 = arith.constant 0 : i32
    %c0_i32_1 = arith.constant 0 : i32
    return %c0_i32, %c0_i32_0 : i32, i32
  }
  func.func @transform_11(%arg0: i32) -> (i32, i32) {
    %c0_i32 = arith.constant 0 : i32
    %c0_i32_0 = arith.constant 0 : i32
    return %arg0, %c0_i32 : i32, i32
  }
}

</mosaic_0001>

<bundles_post_ra>
// kernel: racing_model_forward.1
= control target key start
LH: loop header
LB: loop body
LE: loop exit
PB: predicated region body
PF: predicated region fallthrough
CT: control target
= control target key end

     0   :  { %16 = vsyncpa [#allocation3], 0  ;;  %s1878_s0 = inlined_call_operand.vmem [shape: f32[16,32], index: 0, kind: input, shape index: {}]   ;;  %s1879_s1 = inlined_call_operand.hbm [shape: bf16[32,512], index: 1, kind: input, shape index: {}]   ;;  %s1880_s2 = inlined_call_operand.vmem [shape: f32[1,512], index: 2, kind: input, shape index: {}]   ;;  %s1881_s3 = inlined_call_operand.hbm [shape: bf16[512,256], index: 3, kind: input, shape index: {}]   ;;  %s1882_s4 = inlined_call_operand.vmem [shape: f32[1,256], index: 4, kind: input, shape index: {}]   ;;  %s1883_s5 = inlined_call_operand.hbm [shape: bf16[256,128], index: 5, kind: input, shape index: {}]   ;;  %s1884_s6 = inlined_call_operand.vmem [shape: f32[1,128], index: 6, kind: input, shape index: {}]   ;;  %s1885_s7 = inlined_call_operand.hbm [shape: bf16[128,128], index: 7, kind: input, shape index: {}]   ;;  %s1886_s8 = inlined_call_operand.vmem [shape: f32[1,128], index: 8, kind: input, shape index: {}]   ;;  %s1887_s9 = inlined_call_operand.hbm [shape: bf16[128,128], index: 9, kind: input, shape index: {}]   ;;  %s1888_s10 = inlined_call_operand.vmem [shape: f32[1,128], index: 10, kind: input, shape index: {}]   ;;  %s1889_s11 = inlined_call_operand.vmem [shape: bf16[16,128], index: 11, kind: output, shape index: {}]  }
   0x1   :  { %17 = vsyncpa [#allocation5], 0 }
   0x2   :  { %18 = vsyncpa [#allocation8], 0  ;;  %s1675_s17 = smov [#allocation4]   ;;  %s1559_s21 = scalar_lea.hbm %s1881_s3, 8192 }
   0x3   :  { %s40_s18 = sshll.u32 %s1675_s17, 4  ;;  %p1560_p0 = scmp.ne.s32.totalorder %s1881_s3, %s1559_s21  ;;  %s41_s18 = int_to_ptr.vmem [resolvable:$true] %s40_s18 }
   0x4   :  { %p1563_p1 = scmp.lt.u32.totalorder %s1559_s21, %s1881_s3 }
   0x6   :  { %p1565_p2 = pnand %p1563_p1, %p1560_p0 }
   0x8   :  { %1568 = shalt.err (!%p1565_p2)
}
   0x9   :  { %s1569_s26 = scalar_lea.vmem %s41_s18, 8192  ;;  %p1574_p4 = scmp.lt.s32.totalorder %s41_s18, %s41_s18 }
   0xa   :  { %p1570_p3 = scmp.ne.s32.totalorder %s41_s18, %s1569_s26  ;;  %p1575_p5 = scmp.lt.s32.totalorder %s1569_s26, %s1569_s26 }
   0xc   :  { %p1576_p6 = por %p1575_p5, %p1574_p4 }
   0xe   :  { %p1577_p7 = pnand %p1576_p6, %p1570_p3 }
  0x10   :  { %1580 = shalt.err (!%p1577_p7)
}
  0x11   :  { %s1676_s27 = smov 128   ;;  %s1677_s28 = smov 8  }
  0x12   :  { %46 = dma.hbm_to_vmem [thread:$0]  %s1881_s3, 8192, %s41_s18, [#allocation5], %s1676_s27, %s1676_s27, %s1677_s28  }
  0x13   :  { %s1678_s12 = smov [#allocation7]   ;;  %s1679_s14 = smov [#allocation2]  }
  0x14   :  { %s68_s13 = sshll.u32 %s1678_s12, 4  ;;  %s26_s15 = sshll.u32 %s1679_s14, 4  ;;  %s69_s13 = int_to_ptr.vmem [resolvable:$true] %s68_s13  ;;  %s27_s15 = int_to_ptr.vmem [resolvable:$true] %s26_s15 }
  0x15   :  { %s1581_s19 = scalar_lea.hbm %s1885_s7, 1024 }
  0x16   :  { %p1582_p8 = scmp.ne.s32.totalorder %s1885_s7, %s1581_s19  ;;  %p1585_p9 = scmp.lt.u32.totalorder %s1581_s19, %s1885_s7 }
  0x18   :  { %p1587_p10 = pnand %p1585_p9, %p1582_p8 }
  0x1a   :  { %1590 = shalt.err (!%p1587_p10)
}
  0x1b   :  { %s1591_s3 = scalar_lea.vmem %s69_s13, 1024  ;;  %p1596_p12 = scmp.lt.s32.totalorder %s69_s13, %s69_s13 }
  0x1c   :  { %p1592_p11 = scmp.ne.s32.totalorder %s69_s13, %s1591_s3  ;;  %p1597_p13 = scmp.lt.s32.totalorder %s1591_s3, %s1591_s3 }
  0x1e   :  { %p1598_p0 = por %p1597_p13, %p1596_p12 }
  0x20   :  { %p1599_p1 = pnand %p1598_p0, %p1592_p11 }
  0x22   :  { %1602 = shalt.err (!%p1599_p1)
}
  0x23   :  { %s1680_s18 = smov 64   ;;  %s1681_s24 = smov 4  }
  0x24   :  { %74 = dma.hbm_to_vmem [thread:$0]  %s1885_s7, 1024, %s69_s13, [#allocation8], %s1680_s18, %s1680_s18, %s1681_s24  }
  0x25   :  { %s1603_s29 = scalar_lea.hbm %s1879_s1, 1024 }
  0x26   :  { %p1604_p2 = scmp.ne.s32.totalorder %s1879_s1, %s1603_s29  ;;  %p1607_p3 = scmp.lt.u32.totalorder %s1603_s29, %s1879_s1 }
  0x28   :  { %p1609_p4 = pnand %p1607_p3, %p1604_p2 }
  0x2a   :  { %1612 = shalt.err (!%p1609_p4)
}
  0x2b   :  { %s1613_s17 = scalar_lea.vmem %s27_s15, 1024  ;;  %p1618_p6 = scmp.lt.s32.totalorder %s27_s15, %s27_s15 }
  0x2c   :  { %p1614_p5 = scmp.ne.s32.totalorder %s27_s15, %s1613_s17  ;;  %p1619_p7 = scmp.lt.s32.totalorder %s1613_s17, %s1613_s17 }
  0x2e   :  { %p1620_p8 = por %p1619_p7, %p1618_p6 }
  0x30   :  { %p1621_p9 = pnand %p1620_p8, %p1614_p5 }
  0x32   :  { %1624 = shalt.err (!%p1621_p9)
}
  0x33   :  { %s1682_s7 = smov 256   ;;  %s1683_s13 = smov 16  }
  0x34   :  { %32 = dma.hbm_to_vmem [thread:$0]  %s1879_s1, 1024, %s27_s15, [#allocation3], %s1682_s7, %s1682_s7, %s1683_s13  }
  0x35   :  { %s1684_s21 = smov [#allocation6]   ;;  %s1685_s23 = smov [#allocation9]  }
  0x36   :  { %s54_s22 = sshll.u32 %s1684_s21, 4  ;;  %s82_s3 = sshll.u32 %s1685_s23, 4  ;;  %s55_s22 = int_to_ptr.vmem [resolvable:$true] %s54_s22  ;;  %s83_s3 = int_to_ptr.vmem [resolvable:$true] %s82_s3 }
  0x37   :  { %s1625_s27 = scalar_lea.hbm %s1883_s5, 2048 }
  0x38   :  { %p1626_p10 = scmp.ne.s32.totalorder %s1883_s5, %s1625_s27  ;;  %p1629_p11 = scmp.lt.u32.totalorder %s1625_s27, %s1883_s5 }
  0x3a   :  { %p1631_p12 = pnand %p1629_p11, %p1626_p10 }
  0x3c   :  { %1634 = shalt.err (!%p1631_p12)
}
  0x3d   :  { %s1635_s1 = scalar_lea.vmem %s55_s22, 2048  ;;  %p1640_p0 = scmp.lt.s32.totalorder %s55_s22, %s55_s22 }
  0x3e   :  { %p1636_p13 = scmp.ne.s32.totalorder %s55_s22, %s1635_s1  ;;  %p1641_p1 = scmp.lt.s32.totalorder %s1635_s1, %s1635_s1 }
  0x40   :  { %p1642_p2 = por %p1641_p1, %p1640_p0 }
  0x42   :  { %p1643_p3 = pnand %p1642_p2, %p1636_p13 }
  0x44   :  { %1646 = shalt.err (!%p1643_p3)
}
  0x45   :  { %60 = dma.hbm_to_vmem [thread:$0]  %s1883_s5, 2048, %s55_s22, [#allocation5], %s1680_s18, %s1680_s18, %s1681_s24  }
  0x46   :  { %s1647_s7 = scalar_lea.hbm %s1887_s9, 1024 }
  0x47   :  { %p1648_p4 = scmp.ne.s32.totalorder %s1887_s9, %s1647_s7  ;;  %p1651_p5 = scmp.lt.u32.totalorder %s1647_s7, %s1887_s9 }
  0x49   :  { %p1653_p6 = pnand %p1651_p5, %p1648_p4 }
  0x4b   :  { %1656 = shalt.err (!%p1653_p6)
}
  0x4c   :  { %s1657_s23 = scalar_lea.vmem %s83_s3, 1024  ;;  %p1662_p8 = scmp.lt.s32.totalorder %s83_s3, %s83_s3 }
  0x4d   :  { %p1658_p7 = scmp.ne.s32.totalorder %s83_s3, %s1657_s23  ;;  %p1663_p9 = scmp.lt.s32.totalorder %s1657_s23, %s1657_s23 }
  0x4f   :  { %p1664_p10 = por %p1663_p9, %p1662_p8 }
  0x51   :  { %p1665_p11 = pnand %p1664_p10, %p1658_p7 }
  0x53   :  { %1668 = shalt.err (!%p1665_p11)
}
  0x54   :  { %88 = dma.hbm_to_vmem [thread:$0]  %s1887_s9, 1024, %s83_s3, [#allocation8], %s1680_s18, %s1680_s18, %s1681_s24  }
  0x55   :  { %1669 = dma.done.wait [#allocation3], 1024  }
  0x56   :  { %1670 = vsyncadd [#allocation3], 4294966272 }
  0x57   :  { %1671 = dma.done.wait [#allocation5], 10240  }
  0x58   :  { %1672 = vsyncadd [#allocation5], 4294957056 }
  0x59   :  { %1673 = dma.done.wait [#allocation8], 2048  }
  0x5a   :  { %1674 = vsyncadd [#allocation8], 4294965248  ;;  %v1686_v0 = vmov 0   ;;  %v1415_v1 = vld [vmem:[#allocation2 + $0x4] ss:$16 sps:$4 sm:$0xff]   ;;  %v108_v6 = vld [vmem:[%s1878_s0 + $0x8] sm:$0xff]  ;;  %v120_v56 = vlaneseq }
  0x5b   :  { %216 = vmatprep.mubr.bf16.mxu1 %v1686_v0  ;;  %v1417_v2 = vld [vmem:[#allocation2] ss:$16 sps:$4 sm:$0xff]   ;;  %184 = vmatprep.subr.bf16.mxu1 %v1415_v1  ;;  %v1418_v3 = vld [vmem:[#allocation2 + $0x24] ss:$16 sps:$4 sm:$0xff]   ;;  %v1423_v7 = vld [vmem:[#allocation2 + $0xc] ss:$16 sps:$4 sm:$0xff]  }
  0x5c   :  { %v1420_v4 = vld [vmem:[#allocation2 + $0x20] ss:$16 sps:$4 sm:$0xff]   ;;  %185 = vmatpush1.bf16.msra.mxu1 %v1417_v2  ;;  %v1421_v8 = vld [vmem:[#allocation2 + $0x8] ss:$16 sps:$4 sm:$0xff]   ;;  %v1427_v10 = vld [vmem:[#allocation4 + $0x4] ss:$8 sps:$4 sm:$0xff]  }
  0x5d   :  { %v107_v5 = vld [vmem:[%s1878_s0] sm:$0xff]  ;;  %186 = vmatprep.subr.bf16.mxu1 %v1418_v3  ;;  %vm180_vm0 = vcmask 261120   ;;  %v1426_v12 = vld [vmem:[#allocation2 + $0x2c] ss:$16 sps:$4 sm:$0xff]   ;;  %678 = vmatprep.subr.bf16.mxu0 %v1427_v10  ;;  %v1432_v14 = vld [vmem:[#allocation4 + $0x10] ss:$8 sps:$4 sm:$0xff]  }
  0x5e   :  { %v109_v9 = vpack.c.bf16 %v108_v6, %v107_v5  ;;  %v1429_v11 = vld [vmem:[#allocation4] ss:$8 sps:$4 sm:$0xff]   ;;  %v1430_v13 = vld [vmem:[#allocation4 + $0x14] ss:$8 sps:$4 sm:$0xff]   ;;  %v1433_v15 = vld [vmem:[#allocation4 + $0x24] ss:$8 sps:$4 sm:$0xff]  }
  0x5f   :  { %679 = vmatpush1.bf16.msra.mxu0 %v1429_v11  ;;  %v1424_v16 = vld [vmem:[#allocation2 + $0x28] ss:$16 sps:$4 sm:$0xff]   ;;  %v1436_v18 = vld [vmem:[#allocation4 + $0x34] ss:$8 sps:$4 sm:$0xff]   ;;  %v1439_v20 = vld [vmem:[#allocation4 + $0x44] ss:$8 sps:$4 sm:$0xff]  }
  0x60   :  { %187 = vmatpush1.bf16.msra.mxu1 %v1420_v4  ;;  %680 = vmatprep.subr.bf16.mxu0 %v1430_v13  ;;  %v1435_v17 = vld [vmem:[#allocation4 + $0x20] ss:$8 sps:$4 sm:$0xff]   ;;  %v1438_v19 = vld [vmem:[#allocation4 + $0x30] ss:$8 sps:$4 sm:$0xff]   ;;  %v1442_v22 = vld [vmem:[#allocation4 + $0x54] ss:$8 sps:$4 sm:$0xff]  }
  0x61   :  { %227 = vmatprep.subr.bf16.mxu1 %v1423_v7  ;;  %v1441_v21 = vld [vmem:[#allocation4 + $0x40] ss:$8 sps:$4 sm:$0xff]   ;;  %v1444_v23 = vld [vmem:[#allocation4 + $0x50] ss:$8 sps:$4 sm:$0xff]   ;;  %v1445_v24 = vld [vmem:[#allocation4 + $0x64] ss:$8 sps:$4 sm:$0xff]  }
  0x62   :  { %v1447_v25 = vld [vmem:[#allocation4 + $0x60] ss:$8 sps:$4 sm:$0xff]   ;;  %v1448_v26 = vld [vmem:[#allocation4 + $0x74] ss:$8 sps:$4 sm:$0xff]   ;;  %v1450_v27 = vld [vmem:[#allocation4 + $0x70] ss:$8 sps:$4 sm:$0xff]  }
  0x63   :  { %1203 = vmatmul.mubr.msk.bf16.vlgmr.msra.gmra.mrb[0].mxu1 %vm180_vm0, %v109_v9  ;;  %681 = vmatpush1.bf16.msra.mxu0 %v1432_v14  ;;  %v1451_v28 = vld [vmem:[#allocation4 + $0x84] ss:$8 sps:$4 sm:$0xff]   ;;  %v1453_v29 = vld [vmem:[#allocation4 + $0x80] ss:$8 sps:$4 sm:$0xff]   ;;  %v1454_v30 = vld [vmem:[#allocation4 + $0x94] ss:$8 sps:$4 sm:$0xff]  }
  0x64   :  { %228 = vmatpush1.bf16.msra.mxu1 %v1421_v8  ;;  %259 = vmatprep.mubr.bf16.mxu1 %v1686_v0  ;;  %v1456_v31 = vld [vmem:[#allocation4 + $0x90] ss:$8 sps:$4 sm:$0xff]   ;;  %v1457_v32 = vld [vmem:[#allocation4 + $0xa4] ss:$8 sps:$4 sm:$0xff]   ;;  %v1459_v33 = vld [vmem:[#allocation4 + $0xa0] ss:$8 sps:$4 sm:$0xff]  }
  0x65   :  { %229 = vmatprep.subr.bf16.mxu1 %v1426_v12  ;;  %682 = vmatprep.subr.bf16.mxu0 %v1433_v15  ;;  %v1460_v34 = vld [vmem:[#allocation4 + $0xb4] ss:$8 sps:$4 sm:$0xff]   ;;  %v1462_v35 = vld [vmem:[#allocation4 + $0xb0] ss:$8 sps:$4 sm:$0xff]   ;;  %v1463_v36 = vld [vmem:[#allocation4 + $0xc4] ss:$8 sps:$4 sm:$0xff]  }
  0x66   :  { %v1465_v37 = vld [vmem:[#allocation4 + $0xc0] ss:$8 sps:$4 sm:$0xff]   ;;  %v1466_v38 = vld [vmem:[#allocation4 + $0xd4] ss:$8 sps:$4 sm:$0xff]   ;;  %v1468_v39 = vld [vmem:[#allocation4 + $0xd0] ss:$8 sps:$4 sm:$0xff]  }
  0x67   :  { %683 = vmatpush1.bf16.msra.mxu0 %v1435_v17  ;;  %v1469_v40 = vld [vmem:[#allocation4 + $0xe4] ss:$8 sps:$4 sm:$0xff]   ;;  %v1471_v41 = vld [vmem:[#allocation4 + $0xe0] ss:$8 sps:$4 sm:$0xff]   ;;  %v1472_v42 = vld [vmem:[#allocation4 + $0xf4] ss:$8 sps:$4 sm:$0xff]  }
  0x68   :  { %230 = vmatpush1.bf16.msra.mxu1 %v1424_v16  ;;  %684 = vmatprep.subr.bf16.mxu0 %v1436_v18  ;;  %v1474_v43 = vld [vmem:[#allocation4 + $0xf0] ss:$8 sps:$4 sm:$0xff]   ;;  %v1477_v44 = vld [vmem:[#allocation4 + $0x104] ss:$8 sps:$4 sm:$0xff]   ;;  %v1826_v57 = vshrl.u32 %v120_v56, 7  ;;  %vm1688_vm1 = vmmov 0  }
  0x69   :  { %v1523_v45 = vld [vmem:[#allocation6 + $0x40] sm:$0xff]   ;;  %v1525_v47 = vld [vmem:[#allocation6 + $0x48] sm:$0xff]   ;;  %v1527_v49 = vld [vmem:[#allocation6 + $0x50] sm:$0xff]  }
  0x6a   :  { %v1524_v46 = vld [vmem:[#allocation6] sm:$0xff]   ;;  %1313 = vmatprep.subr.bf16.mxu1 %v1523_v45  ;;  %v1526_v48 = vld [vmem:[#allocation6 + $0x8] sm:$0xff]   ;;  %v1528_v50 = vld [vmem:[#allocation6 + $0x10] sm:$0xff]   ;;  %v122_v58 = vsub.s32 0, %v1826_v57  ;;  %v126_v60 = vsub.s32 1, %v1826_v57  ;;  %v130_v2 = vsub.s32 2, %v1826_v57 }
  0x6b   :  { %1204 = vmatmul.mubr.msk.bf16.vlgmr.msra.gmra.mrb[4].mxu1 %vm180_vm0, %v109_v9  ;;  %685 = vmatpush1.bf16.msra.mxu0 %v1438_v19  ;;  %v1529_v51 = vld [vmem:[#allocation6 + $0x58] sm:$0xff]   ;;  %v1531_v53 = vld [vmem:[#allocation6 + $0x60] sm:$0xff]   ;;  %v1533_v55 = vld [vmem:[#allocation6 + $0x68] sm:$0xff]   ;;  %v134_v5 = vsub.s32 3, %v1826_v57 }
  0x6c   :  { %686 = vmatprep.subr.bf16.mxu0 %v1439_v20  ;;  %1314 = vmatpush3.bf16.msra.mxu1 %v1524_v46  ;;  %v1530_v52 = vld [vmem:[#allocation6 + $0x18] sm:$0xff]   ;;  %v1532_v54 = vld [vmem:[#allocation6 + $0x20] sm:$0xff]   ;;  %v1540_v57 = vld [vmem:[#allocation7 + $0x8] sm:$0xff]  }
  0x6d   :  { %1315 = vmatprep.subr.bf16.mxu1 %v1525_v47  ;;  %v118_v59 = vld [vmem:[%s1880_s2] sm:$0xf]  ;;  %v1480_v19 = vld [vmem:[#allocation4 + $0x114] ss:$8 sps:$4 sm:$0xff]   ;;  %v1496_v45 = vld [vmem:[#allocation4 + $0x170] ss:$8 sps:$4 sm:$0xff]  }
  0x6e   :  { %v123_v61 = vrot.slane %v118_v59, %v122_v58  ;;  %v127_v62 = vrot.slane %v118_v59, %v126_v60  ;;  %v131_v11 = vrot.slane %v118_v59, %v130_v2  ;;  %v135_v14 = vrot.slane %v118_v59, %v134_v5  ;;  %v1475_v17 = vld [vmem:[#allocation4 + $0x100] ss:$8 sps:$4 sm:$0xff]   ;;  %v1501_v46 = vld [vmem:[#allocation4 + $0x184] ss:$8 sps:$4 sm:$0xff]   ;;  %v1516_v56 = vld [vmem:[#allocation4 + $0x1d4] ss:$8 sps:$4 sm:$0xff]  }
  0x6f   :  { %687 = vmatpush1.bf16.msra.mxu0 %v1441_v21  ;;  %v1499_v47 = vld [vmem:[#allocation4 + $0x180] ss:$8 sps:$4 sm:$0xff]   ;;  %v1514_v59 = vld [vmem:[#allocation4 + $0x1d0] ss:$8 sps:$4 sm:$0xff]  }
  0x70   :  { %688 = vmatprep.subr.bf16.mxu0 %v1442_v22  ;;  %1316 = vmatpush3.bf16.msra.mxu1 %v1526_v48  ;;  %v1504_v48 = vld [vmem:[#allocation4 + $0x194] ss:$8 sps:$4 sm:$0xff]  }
  0x71   :  { %1317 = vmatprep.subr.bf16.mxu1 %v1527_v49  ;;  %v1502_v49 = vld [vmem:[#allocation4 + $0x190] ss:$8 sps:$4 sm:$0xff]  }
  0x72   :  { %v1535_v2 = vld [vmem:[#allocation6 + $0x70] sm:$0xff]   ;;  %v1538_v5 = vld [vmem:[#allocation6 + $0x38] sm:$0xff]  }
  0x73   :  { %689 = vmatpush1.bf16.msra.mxu0 %v1444_v23 }
  0x74   :  { %690 = vmatprep.subr.bf16.mxu0 %v1445_v24  ;;  %1318 = vmatpush3.bf16.msra.mxu1 %v1528_v50  ;;  %v1507_v50 = vld [vmem:[#allocation4 + $0x1a4] ss:$8 sps:$4 sm:$0xff]  }
  0x75   :  { %1319 = vmatprep.subr.bf16.mxu1 %v1529_v51  ;;  %v1505_v51 = vld [vmem:[#allocation4 + $0x1a0] ss:$8 sps:$4 sm:$0xff]  }
  0x77   :  { %691 = vmatpush1.bf16.msra.mxu0 %v1447_v25 }
  0x78   :  { %692 = vmatprep.subr.bf16.mxu0 %v1448_v26  ;;  %1320 = vmatpush3.bf16.msra.mxu1 %v1530_v52  ;;  %v1510_v52 = vld [vmem:[#allocation4 + $0x1b4] ss:$8 sps:$4 sm:$0xff]  }
  0x79   :  { %1321 = vmatprep.subr.bf16.mxu1 %v1531_v53  ;;  %v1508_v53 = vld [vmem:[#allocation4 + $0x1b0] ss:$8 sps:$4 sm:$0xff]  }
  0x7b   :  { %693 = vmatpush1.bf16.msra.mxu0 %v1450_v27  ;;  %v1478_v27 = vld [vmem:[#allocation4 + $0x110] ss:$8 sps:$4 sm:$0xff]  }
  0x7c   :  { %694 = vmatprep.subr.bf16.mxu0 %v1451_v28  ;;  %1322 = vmatpush3.bf16.msra.mxu1 %v1532_v54  ;;  %v1513_v54 = vld [vmem:[#allocation4 + $0x1c4] ss:$8 sps:$4 sm:$0xff]  }
  0x7d   :  { %1323 = vmatprep.subr.bf16.mxu1 %v1533_v55  ;;  %v1511_v55 = vld [vmem:[#allocation4 + $0x1c0] ss:$8 sps:$4 sm:$0xff]  }
  0x7f   :  { %695 = vmatpush1.bf16.msra.mxu0 %v1453_v29 }
  0x80   :  { %696 = vmatprep.subr.bf16.mxu0 %v1454_v30  ;;  %v1483_v30 = vld [vmem:[#allocation4 + $0x124] ss:$8 sps:$4 sm:$0xff]  }
  0x83   :  { %697 = vmatpush1.bf16.msra.mxu0 %v1456_v31 }
  0x84   :  { %698 = vmatprep.subr.bf16.mxu0 %v1457_v32 }
  0x87   :  { %699 = vmatpush1.bf16.msra.mxu0 %v1459_v33 }
  0x88   :  { %700 = vmatprep.subr.bf16.mxu0 %v1460_v34  ;;  %v1481_v34 = vld [vmem:[#allocation4 + $0x120] ss:$8 sps:$4 sm:$0xff]  }
  0x8b   :  { %701 = vmatpush1.bf16.msra.mxu0 %v1462_v35 }
  0x8c   :  { %702 = vmatprep.subr.bf16.mxu0 %v1463_v36  ;;  %v1486_v36 = vld [vmem:[#allocation4 + $0x134] ss:$8 sps:$4 sm:$0xff]  }
  0x8f   :  { %703 = vmatpush1.bf16.msra.mxu0 %v1465_v37  ;;  %v1484_v37 = vld [vmem:[#allocation4 + $0x130] ss:$8 sps:$4 sm:$0xff]  }
  0x90   :  { %704 = vmatprep.subr.bf16.mxu0 %v1466_v38  ;;  %v1489_v38 = vld [vmem:[#allocation4 + $0x144] ss:$8 sps:$4 sm:$0xff]  }
  0x93   :  { %705 = vmatpush1.bf16.msra.mxu0 %v1468_v39  ;;  %v1487_v39 = vld [vmem:[#allocation4 + $0x140] ss:$8 sps:$4 sm:$0xff]  }
  0x94   :  { %706 = vmatprep.subr.bf16.mxu0 %v1469_v40  ;;  %v1492_v40 = vld [vmem:[#allocation4 + $0x154] ss:$8 sps:$4 sm:$0xff]  }
  0x97   :  { %707 = vmatpush1.bf16.msra.mxu0 %v1471_v41  ;;  %v1490_v41 = vld [vmem:[#allocation4 + $0x150] ss:$8 sps:$4 sm:$0xff]  }
  0x98   :  { %708 = vmatprep.subr.bf16.mxu0 %v1472_v42  ;;  %v1495_v42 = vld [vmem:[#allocation4 + $0x164] ss:$8 sps:$4 sm:$0xff]  }
  0x9b   :  { %709 = vmatpush1.bf16.msra.mxu0 %v1474_v43  ;;  %v1493_v43 = vld [vmem:[#allocation4 + $0x160] ss:$8 sps:$4 sm:$0xff]  }
  0x9c   :  { %721 = vmatprep.subr.bf16.mxu0 %v1477_v44  ;;  %v1498_v44 = vld [vmem:[#allocation4 + $0x174] ss:$8 sps:$4 sm:$0xff]  }
 0x136   :  { %v218_v63 = vpop.f32.mrb[0].mxu1 }
 0x137   :  { %v219_v0 = vadd.f32 %v218_v63, %v123_v61  ;;  %v220_v1 = vpop.f32.mrb[1].mxu1  ;;  %v1522_v63 = vld [vmem:[#allocation4 + $0x1f4] ss:$8 sps:$4 sm:$0xff]  }
 0x138   :  { %v221_v3 = vadd.f32 %v220_v1, %v127_v62  ;;  %v222_v4 = vpop.f32.mrb[2].mxu1  ;;  %v1534_v1 = vld [vmem:[#allocation6 + $0x28] sm:$0xff]  }
 0x139   :  { %v223_v6 = vadd.f32 %v222_v4, %v123_v61  ;;  %v224_v7 = vpop.f32.mrb[3].mxu1  ;;  %v270_v9 = vmax.f32 %v219_v0, 0.0  ;;  %v1519_v61 = vld [vmem:[#allocation4 + $0x1e4] ss:$8 sps:$4 sm:$0xff]   ;;  %v1520_v0 = vld [vmem:[#allocation4 + $0x1f0] ss:$8 sps:$4 sm:$0xff]   ;;  %1324 = vmatpush3.bf16.msra.mxu1 %v1534_v1 }
 0x13a   :  { %v225_v8 = vadd.f32 %v224_v7, %v127_v62  ;;  %v271_v12 = vmax.f32 %v221_v3, 0.0  ;;  %v1517_v62 = vld [vmem:[#allocation4 + $0x1e0] ss:$8 sps:$4 sm:$0xff]   ;;  %v1536_v3 = vld [vmem:[#allocation6 + $0x30] sm:$0xff]   ;;  %1325 = vmatprep.subr.bf16.mxu1 %v1535_v2  ;;  %v1537_v4 = vld [vmem:[#allocation6 + $0x78] sm:$0xff]  }
 0x13b   :  { %v274_v10 = vmax.f32 %v223_v6, 0.0  ;;  %v1687_v6 = vmov 0.0   ;;  %v346_v7 = vld [vmem:[%s1882_s4] sm:$0x3] }
 0x13c   :  { %v275_v13 = vmax.f32 %v225_v8, 0.0  ;;  %v351_v8 = vrot.slane %v346_v7, %v122_v58  ;;  %v1541_v58 = vld [vmem:[#allocation7 + $0x10] sm:$0xff]  }
 0x13d   :  { %v278_v15 = vpack.c.bf16 %v274_v10, %v270_v9  ;;  %1326 = vmatpush3.bf16.msra.mxu1 %v1536_v3  ;;  %v355_v9 = vrot.slane %v346_v7, %v126_v60  ;;  %v1542_v60 = vld [vmem:[#allocation7 + $0x18] sm:$0xff]  }
 0x13e   :  { %v279_v16 = vpack.c.bf16 %v275_v13, %v271_v12  ;;  %v261_v18 = vpop.f32.mrb[4].mxu1  ;;  %1327 = vmatprep.subr.bf16.mxu1 %v1537_v4 }
 0x13f   :  { %v262_v20 = vadd.f32 %v261_v18, %v131_v11  ;;  %v263_v21 = vpop.f32.mrb[5].mxu1 }
 0x140   :  { %710 = vmatprep.mubr.bf16.mxu0 %v279_v16  ;;  %v264_v22 = vadd.f32 %v263_v21, %v135_v14  ;;  %v265_v23 = vpop.f32.mrb[6].mxu1 }
 0x141   :  { %711 = vmatmul.mubr.bf16.vlgmr.msra.gmra.mrb[0].mxu0 %v278_v15  ;;  %v272_v24 = vmax.f32 %v262_v20, 0.0  ;;  %v266_v25 = vadd.f32 %v265_v23, %v131_v11  ;;  %v267_v26 = vpop.f32.mrb[7].mxu1  ;;  %1328 = vmatpush3.bf16.msra.mxu1 %v1538_v5 }
 0x142   :  { %722 = vmatpush1.bf16.msra.mxu0 %v1475_v17  ;;  %v273_v28 = vmax.f32 %v264_v22, 0.0  ;;  %v268_v29 = vadd.f32 %v267_v26, %v135_v14  ;;  %1353 = vmatprep.subr.bf16.mxu1 %v1687_v6  ;;  %v1544_v26 = vld [vmem:[#allocation7 + $0x28] sm:$0xff]  }
 0x143   :  { %723 = vmatprep.subr.bf16.mxu0 %v1480_v19  ;;  %v276_v31 = vmax.f32 %v266_v25, 0.0  ;;  %v1543_v25 = vld [vmem:[#allocation7 + $0x20] sm:$0xff]  }
 0x144   :  { %v277_v32 = vmax.f32 %v268_v29, 0.0 }
 0x145   :  { %v280_v33 = vpack.c.bf16 %v276_v31, %v272_v24  ;;  %v1539_v24 = vld [vmem:[#allocation7] sm:$0xff]  }
 0x146   :  { %724 = vmatpush1.bf16.msra.mxu0 %v1478_v27  ;;  %v281_v35 = vpack.c.bf16 %v277_v32, %v273_v28  ;;  %v1545_v27 = vld [vmem:[#allocation7 + $0x30] sm:$0xff]   ;;  %v1546_v28 = vld [vmem:[#allocation7 + $0x38] sm:$0xff]  }
 0x147   :  { %725 = vmatprep.subr.bf16.mxu0 %v1483_v30  ;;  %v1269_v30 = vld [vmem:[%s1884_s6] ss:$0 sm:$0xff] }
 0x148   :  { %753 = vmatprep.mubr.bf16.mxu0 %v281_v35 }
 0x14a   :  { %726 = vmatpush1.bf16.msra.mxu0 %v1481_v34 }
 0x14b   :  { %727 = vmatprep.subr.bf16.mxu0 %v1486_v36 }
 0x14e   :  { %728 = vmatpush1.bf16.msra.mxu0 %v1484_v37 }
 0x14f   :  { %729 = vmatprep.subr.bf16.mxu0 %v1489_v38 }
 0x152   :  { %730 = vmatpush1.bf16.msra.mxu0 %v1487_v39 }
 0x153   :  { %731 = vmatprep.subr.bf16.mxu0 %v1492_v40  ;;  %v1547_v40 = vld [vmem:[#allocation9] sm:$0xff]  }
 0x156   :  { %732 = vmatpush1.bf16.msra.mxu0 %v1490_v41 }
 0x157   :  { %733 = vmatprep.subr.bf16.mxu0 %v1495_v42  ;;  %v1548_v42 = vld [vmem:[#allocation9 + $0x8] sm:$0xff]  }
 0x15a   :  { %734 = vmatpush1.bf16.msra.mxu0 %v1493_v43  ;;  %v1549_v43 = vld [vmem:[#allocation9 + $0x10] sm:$0xff]  }
 0x15b   :  { %735 = vmatprep.subr.bf16.mxu0 %v1498_v44  ;;  %v1550_v44 = vld [vmem:[#allocation9 + $0x18] sm:$0xff]  }
 0x15e   :  { %736 = vmatpush1.bf16.msra.mxu0 %v1496_v45  ;;  %v1551_v45 = vld [vmem:[#allocation9 + $0x20] sm:$0xff]  }
 0x15f   :  { %737 = vmatprep.subr.bf16.mxu0 %v1501_v46  ;;  %v1552_v46 = vld [vmem:[#allocation9 + $0x28] sm:$0xff]  }
 0x162   :  { %738 = vmatpush1.bf16.msra.mxu0 %v1499_v47  ;;  %v1553_v47 = vld [vmem:[#allocation9 + $0x30] sm:$0xff]  }
 0x163   :  { %739 = vmatprep.subr.bf16.mxu0 %v1504_v48  ;;  %v1554_v48 = vld [vmem:[#allocation9 + $0x38] sm:$0xff]  }
 0x166   :  { %740 = vmatpush1.bf16.msra.mxu0 %v1502_v49  ;;  %v1286_v49 = vld [vmem:[%s1886_s8] ss:$0 sm:$0xff] }
 0x167   :  { %741 = vmatprep.subr.bf16.mxu0 %v1507_v50 }
 0x16a   :  { %742 = vmatpush1.bf16.msra.mxu0 %v1505_v51 }
 0x16b   :  { %743 = vmatprep.subr.bf16.mxu0 %v1510_v52 }
 0x16e   :  { %744 = vmatpush1.bf16.msra.mxu0 %v1508_v53 }
 0x16f   :  { %745 = vmatprep.subr.bf16.mxu0 %v1513_v54 }
 0x172   :  { %746 = vmatpush1.bf16.msra.mxu0 %v1511_v55 }
 0x173   :  { %747 = vmatprep.subr.bf16.mxu0 %v1516_v56 }
 0x176   :  { %748 = vmatpush1.bf16.msra.mxu0 %v1514_v59 }
 0x177   :  { %749 = vmatprep.subr.bf16.mxu0 %v1519_v61 }
 0x17a   :  { %750 = vmatpush1.bf16.msra.mxu0 %v1517_v62  ;;  %v1295_v62 = vld [vmem:[%s1888_s10] ss:$0 sm:$0xff] }
 0x17b   :  { %751 = vmatprep.subr.bf16.mxu0 %v1522_v63 }
 0x17e   :  { %752 = vmatpush1.bf16.msra.mxu0 %v1520_v0 }
 0x181   :  { %754 = vmatmul.mubr.bf16.vlgmr.msra.gmra.mrb[0].mxu0 %v280_v33 }
 0x254   :  { %v755_v10 = vpop.f32.mrb[0].mxu0 }
 0x255   :  { %v1393_v11 = vadd.f32 %v755_v10, %v351_v8  ;;  %v757_v12 = vpop.f32.mrb[1].mxu0 }
 0x256   :  { %v1394_v13 = vadd.f32 %v757_v12, %v355_v9  ;;  %v759_v14 = vpop.f32.mrb[2].mxu0 }
 0x257   :  { %v1395_v15 = vadd.f32 %v759_v14, %v351_v8  ;;  %v761_v16 = vpop.f32.mrb[3].mxu0  ;;  %v764_v18 = vmax.f32 %v1393_v11, 0.0 }
 0x258   :  { %v1396_v17 = vadd.f32 %v761_v16, %v355_v9  ;;  %v765_v20 = vmax.f32 %v1394_v13, 0.0 }
 0x259   :  { %v766_v19 = vmax.f32 %v1395_v15, 0.0 }
 0x25a   :  { %v767_v21 = vmax.f32 %v1396_v17, 0.0 }
 0x25b   :  { %v768_v22 = vpack.c.bf16 %v766_v19, %v764_v18 }
 0x25c   :  { %v769_v23 = vpack.c.bf16 %v767_v21, %v765_v20 }
 0x25e   :  { %937 = vmatprep.mubr.bf16.mxu1 %v769_v23 }
 0x25f   :  { %938 = vmatmul.mubr.bf16.vlgmr.msra.gmra.mrb[8].mxu1 %v768_v22 }
 0x260   :  { %1354 = vmatpush3.bf16.msra.mxu1 %v1539_v24  ;;  %1369 = vmatprep.mubr.msk.bf16.mxu1 %vm1688_vm1, %v1687_v6 }
 0x261   :  { %1355 = vmatprep.subr.bf16.mxu1 %v1687_v6 }
 0x264   :  { %1356 = vmatpush3.bf16.msra.mxu1 %v1540_v57 }
 0x265   :  { %1357 = vmatprep.subr.bf16.mxu1 %v1687_v6 }
 0x268   :  { %1358 = vmatpush3.bf16.msra.mxu1 %v1541_v58 }
 0x269   :  { %1359 = vmatprep.subr.bf16.mxu1 %v1687_v6 }
 0x26c   :  { %1360 = vmatpush3.bf16.msra.mxu1 %v1542_v60 }
 0x26d   :  { %1361 = vmatprep.subr.bf16.mxu1 %v1687_v6 }
 0x270   :  { %1362 = vmatpush3.bf16.msra.mxu1 %v1543_v25 }
 0x271   :  { %1363 = vmatprep.subr.bf16.mxu1 %v1687_v6 }
 0x274   :  { %1364 = vmatpush3.bf16.msra.mxu1 %v1544_v26 }
 0x275   :  { %1365 = vmatprep.subr.bf16.mxu1 %v1687_v6 }
 0x278   :  { %1366 = vmatpush3.bf16.msra.mxu1 %v1545_v27 }
 0x279   :  { %1367 = vmatprep.subr.bf16.mxu1 %v1687_v6 }
 0x27c   :  { %1368 = vmatpush3.bf16.msra.mxu1 %v1546_v28 }
 0x27d   :  { %1373 = vmatprep.subr.bf16.mxu1 %v1687_v6 }
 0x332   :  { %v1329_v29 = vpop.f32.mrb[8].mxu1 }
 0x333   :  { %v1330_v31 = vpop.f32.mrb[9].mxu1 }
 0x334   :  { %v1331_v32 = vadd.f32 %v1330_v31, %v1329_v29  ;;  %v1332_v33 = vpop.f32.mrb[10].mxu1 }
 0x335   :  { %v1333_v34 = vpop.f32.mrb[11].mxu1 }
 0x336   :  { %v940_v35 = vadd.f32 %v1331_v32, %v1269_v30  ;;  %v1334_v36 = vadd.f32 %v1333_v34, %v1332_v33 }
 0x338   :  { %v943_v37 = vadd.f32 %v1334_v36, %v1269_v30  ;;  %v946_v38 = vmax.f32 %v940_v35, 0.0 }
 0x33a   :  { %v947_v39 = vmax.f32 %v943_v37, 0.0 }
 0x33c   :  { %v948_v41 = vpack.c.bf16 %v947_v39, %v946_v38 }
 0x33e   :  { %1370 = vmatmul.mubr.bf16.vlgmr.msra.gmra.mrb[12].mxu1 %v948_v41 }
 0x33f   :  { %1374 = vmatpush3.bf16.msra.mxu1 %v1547_v40  ;;  %1389 = vmatprep.mubr.msk.bf16.mxu1 %vm1688_vm1, %v1687_v6 }
 0x340   :  { %1375 = vmatprep.subr.bf16.mxu1 %v1687_v6 }
 0x343   :  { %1376 = vmatpush3.bf16.msra.mxu1 %v1548_v42 }
 0x344   :  { %1377 = vmatprep.subr.bf16.mxu1 %v1687_v6 }
 0x347   :  { %1378 = vmatpush3.bf16.msra.mxu1 %v1549_v43 }
 0x348   :  { %1379 = vmatprep.subr.bf16.mxu1 %v1687_v6 }
 0x34b   :  { %1380 = vmatpush3.bf16.msra.mxu1 %v1550_v44 }
 0x34c   :  { %1381 = vmatprep.subr.bf16.mxu1 %v1687_v6 }
 0x34f   :  { %1382 = vmatpush3.bf16.msra.mxu1 %v1551_v45 }
 0x350   :  { %1383 = vmatprep.subr.bf16.mxu1 %v1687_v6 }
 0x353   :  { %1384 = vmatpush3.bf16.msra.mxu1 %v1552_v46 }
 0x354   :  { %1385 = vmatprep.subr.bf16.mxu1 %v1687_v6 }
 0x357   :  { %1386 = vmatpush3.bf16.msra.mxu1 %v1553_v47 }
 0x358   :  { %1387 = vmatprep.subr.bf16.mxu1 %v1687_v6 }
 0x35b   :  { %1388 = vmatpush3.bf16.msra.mxu1 %v1554_v48 }
 0x411   :  { %v1054_v50 = vpop.f32.mrb[12].mxu1 }
 0x412   :  { %v1055_v51 = vadd.f32 %v1286_v49, %v1054_v50  ;;  %v1371_v52 = vpop.f32.mrb[13].mxu1 }
 0x413   :  { %v1057_v53 = vpop.f32.mrb[14].mxu1 }
 0x414   :  { %v1058_v54 = vadd.f32 %v1286_v49, %v1057_v53  ;;  %v1372_v55 = vpop.f32.mrb[15].mxu1  ;;  %v1061_v56 = vmax.f32 %v1055_v51, 0.0 }
 0x416   :  { %v1062_v59 = vmax.f32 %v1058_v54, 0.0 }
 0x418   :  { %v1063_v61 = vpack.c.bf16 %v1062_v59, %v1061_v56 }
 0x41a   :  { %1390 = vmatmul.mubr.bf16.vlgmr.msra.gmra.mrb[16].mxu1 %v1063_v61 }
 0x4ed   :  { %v1169_v63 = vpop.f32.mrb[16].mxu1 }
 0x4ee   :  { %v1170_v0 = vadd.f32 %v1295_v62, %v1169_v63  ;;  %v1391_v1 = vpop.f32.mrb[17].mxu1 }
 0x4ef   :  { %v1172_v2 = vpop.f32.mrb[18].mxu1 }
 0x4f0   :  { %v1173_v3 = vadd.f32 %v1295_v62, %v1172_v2  ;;  %v1392_v4 = vpop.f32.mrb[19].mxu1  ;;  %1555 = vtanh.f32 %v1170_v0 }
 0x4f2   :  { %1557 = vtanh.f32 %v1173_v3 }
 0x4fa   :  { %v1556_v5 = vpop.eup %1555 }
 0x4fc   :  { %v1558_v6 = vpop.eup %1557 }
 0x4fd   :  { %v1311_v7 = vpack.c.bf16 %v1558_v6, %v1556_v5 }
 0x4ff   :  { %1312 = vst [vmem:[%s1889_s11] sm:$0xff] %v1311_v7  }
 0x500   :  { %1192 = vsyncpa [#allocation3], 1 }
 0x501   :  { %1193 = vsyncpa [#allocation5], 1 }
 0x502   :  { %1194 = vsyncpa [#allocation8], 1 }

</bundles_post_ra>
